<compile_context>
chip_gen: v7x
topology: tpu7x:2x2x1
jax: 0.10.0
libtpu: 0.0.40
codegen_flags: <defaults>
</compile_context>

<pallas_src>
import functools

import jax
import jax.numpy as jnp
from jax.experimental import pallas as pl
from jax.experimental.pallas import tpu as pltpu

EPS = 1e-5
_VMEM_LIMIT = 32 * 1024 * 1024  # fits scoped/physical VMEM on v5e/v6e/v7x with headroom


def _round_up(x, m):
    return (x + m - 1) // m * m


def _stats_kernel(x_ref, sum_ref, sq_ref):
    """Pass 1: accumulate per-row sum and sum-of-squares across HW tiles."""
    @pl.when(pl.program_id(1) == 0)
    def _():
        sum_ref[...] = jnp.zeros_like(sum_ref)
        sq_ref[...] = jnp.zeros_like(sq_ref)

    x = x_ref[...].astype(jnp.float32)
    sum_ref[...] += jnp.sum(x, axis=1, keepdims=True)
    sq_ref[...] += jnp.sum(x * x, axis=1, keepdims=True)


def _apply_kernel(x_ref, a_ref, b_ref, o_ref):
    """Pass 2: fused normalization, out = x * a + b (a, b per (n, c) row)."""
    x = x_ref[...].astype(jnp.float32)
    o_ref[...] = (x * a_ref[...] + b_ref[...]).astype(o_ref.dtype)


@jax.jit
def hybrid_normalization(x_nchw, gamma, beta):
    """x_nchw: (N, C, H, W); gamma, beta: (C,) BatchNorm affine params."""
    N, C, H, W = x_nchw.shape
    NC, HW = N * C, H * W

    # Lane-dense / sublane-full tiling.
    THW = 1024 if HW >= 1024 else _round_up(HW, 128)
    HW_pad = _round_up(HW, THW)
    R = min(_round_up(NC, 8), 64)
    NC_pad = _round_up(NC, R)
    num_r = NC_pad // R
    num_t = HW_pad // THW

    x2 = x_nchw.reshape(NC, HW)
    if NC_pad != NC or HW_pad != HW:
        x2 = jnp.pad(x2, ((0, NC_pad - NC), (0, HW_pad - HW)))

    itemsize = jnp.dtype(x_nchw.dtype).itemsize

    # ---- Pass 1: per-row sum / sum-of-squares -------------------------------------
    sums, sqs = pl.pallas_call(
        _stats_kernel,
        grid=(num_r, num_t),
        in_specs=[pl.BlockSpec((R, THW), lambda i, j: (i, j))],
        out_specs=(
            pl.BlockSpec((R, 1), lambda i, j: (i, 0)),
            pl.BlockSpec((R, 1), lambda i, j: (i, 0)),
        ),
        out_shape=(
            jax.ShapeDtypeStruct((NC_pad, 1), jnp.float32),
            jax.ShapeDtypeStruct((NC_pad, 1), jnp.float32),
        ),
        compiler_params=pltpu.CompilerParams(
            dimension_semantics=("parallel", "arbitrary"),
            vmem_limit_bytes=_VMEM_LIMIT,
        ),
        cost_estimate=pl.CostEstimate(
            flops=3 * NC_pad * HW_pad,
            transcendentals=0,
            bytes_accessed=NC_pad * HW_pad * itemsize + 2 * NC_pad * 4,
        ),
    )(x2)

    # ---- Tiny O(N*C) stats fusion (plain JAX, negligible work) ---------------------
    inv_hw = 1.0 / float(HW)
    s = sums[:NC, 0].reshape(N, C)
    q = sqs[:NC, 0].reshape(N, C)
    mean_in = s * inv_hw                                   # per (n, c)
    ex2_in = q * inv_hw
    var_in = jnp.maximum(ex2_in - mean_in * mean_in, 0.0)  # clamp before eps
    mean_bn = jnp.mean(mean_in, axis=0)                    # per c, over N (and HW)
    ex2_bn = jnp.mean(ex2_in, axis=0)
    var_bn = jnp.maximum(ex2_bn - mean_bn * mean_bn, 0.0)
    rs_in = 1.0 / jnp.sqrt(var_in + EPS)
    rs_bn = 1.0 / jnp.sqrt(var_bn + EPS)
    g = gamma.astype(jnp.float32)
    bt = beta.astype(jnp.float32)
    a = 0.5 * rs_in + 0.5 * g * rs_bn                      # (N, C)
    b = 0.5 * bt - 0.5 * mean_in * rs_in - 0.5 * g * mean_bn * rs_bn

    a2 = a.reshape(NC, 1)
    b2 = b.reshape(NC, 1)
    if NC_pad != NC:
        a2 = jnp.pad(a2, ((0, NC_pad - NC), (0, 0)))
        b2 = jnp.pad(b2, ((0, NC_pad - NC), (0, 0)))

    # ---- Pass 2: fused out = x * a + b ---------------------------------------------
    out_p = pl.pallas_call(
        _apply_kernel,
        grid=(num_r, num_t),
        in_specs=[
            pl.BlockSpec((R, THW), lambda i, j: (i, j)),
            pl.BlockSpec((R, 1), lambda i, j: (i, 0)),
            pl.BlockSpec((R, 1), lambda i, j: (i, 0)),
        ],
        out_specs=pl.BlockSpec((R, THW), lambda i, j: (i, j)),
        out_shape=jax.ShapeDtypeStruct((NC_pad, HW_pad), x_nchw.dtype),
        compiler_params=pltpu.CompilerParams(
            dimension_semantics=("parallel", "parallel"),
            vmem_limit_bytes=_VMEM_LIMIT,
        ),
        cost_estimate=pl.CostEstimate(
            flops=2 * NC_pad * HW_pad,
            transcendentals=0,
            bytes_accessed=2 * NC_pad * HW_pad * itemsize + 2 * NC_pad * 4,
        ),
    )(x2, a2, b2)

    return out_p[:NC, :HW].reshape(N, C, H, W)


def _reference(x, gamma, beta):
    x = x.astype(jnp.float32)
    mean_in = jnp.mean(x, axis=(2, 3), keepdims=True)
    var_in = jnp.mean((x - mean_in) ** 2, axis=(2, 3), keepdims=True)
    x_in = (x - mean_in) / jnp.sqrt(var_in + EPS)
    mean_bn = jnp.mean(x, axis=(0, 2, 3), keepdims=True)
    var_bn = jnp.mean((x - mean_bn) ** 2, axis=(0, 2, 3), keepdims=True)
    x_bn = (x - mean_bn) / jnp.sqrt(var_bn + EPS)
    x_bn = x_bn * gamma.reshape(1, -1, 1, 1) + beta.reshape(1, -1, 1, 1)
    return 0.5 * x_in + 0.5 * x_bn


if __name__ == "__main__":
    key = jax.random.PRNGKey(0)
    N, C, H, W = 2, 4, 16, 16
    x = jax.random.normal(key, (N, C, H, W), dtype=jnp.float32)

    # Deterministic params matching nn.BatchNorm2d defaults at init.
    gamma = jnp.ones((C,), dtype=jnp.float32)
    beta = jnp.zeros((C,), dtype=jnp.float32)

    out = hybrid_normalization(x, gamma, beta)
    out = jax.block_until_ready(out)

    ref = _reference(x, gamma, beta)
    assert out.shape == (N, C, H, W)
    assert jnp.allclose(out, ref, atol=1e-4, rtol=1e-4)
    print("KERNEL_OK")
</pallas_src>

<mosaic_0001>
module attributes {stable_mosaic.version = 11 : i64} {
  func.func @_stats_kernel(%arg0: i32, %arg1: i32, %arg2: memref<8x256xf32, #tpu.memory_space<vmem>>, %arg3: memref<8x1xf32, #tpu.memory_space<vmem>>, %arg4: memref<8x1xf32, #tpu.memory_space<vmem>>) attributes {dimension_semantics = [#tpu.dimension_semantics<parallel>, #tpu.dimension_semantics<arbitrary>], iteration_bounds = array<i64: 1, 1>, scalar_prefetch = 0 : i64, scratch_operands = 0 : i64, tpu.core_type = #tpu.core_type<tc>, window_params = [{transform_indices = @transform_0, window_bounds = array<i64: 8, 256>}, {transform_indices = @transform_1, window_bounds = array<i64: 8, 1>}, {transform_indices = @transform_2, window_bounds = array<i64: 8, 1>}]} {
    %c0_i32 = arith.constant 0 : i32
    %0 = arith.cmpi eq, %arg1, %c0_i32 : i32
    %1 = arith.extui %0 : i1 to i32
    %c0_i32_0 = arith.constant 0 : i32
    %2 = arith.cmpi ne, %1, %c0_i32_0 : i32
    scf.if %2 {
      %cst_11 = arith.constant 0.000000e+00 : f32
      %15 = vector.broadcast %cst_11 : f32 to vector<8x1xf32>
      %c0_12 = arith.constant 0 : index
      %c0_13 = arith.constant 0 : index
      %16 = vector.load %arg3[%c0_12, %c0_13] : memref<8x1xf32, #tpu.memory_space<vmem>>, vector<8x1xf32>
      tpu.vector_store %arg3[%c0_12, %c0_13], %15 {strides = array<i32>} : memref<8x1xf32, #tpu.memory_space<vmem>>, vector<8x1xf32>,
      %cst_14 = arith.constant 0.000000e+00 : f32
      %17 = vector.broadcast %cst_14 : f32 to vector<8x1xf32>
      %c0_15 = arith.constant 0 : index
      %c0_16 = arith.constant 0 : index
      %18 = vector.load %arg4[%c0_15, %c0_16] : memref<8x1xf32, #tpu.memory_space<vmem>>, vector<8x1xf32>
      tpu.vector_store %arg4[%c0_15, %c0_16], %17 {strides = array<i32>} : memref<8x1xf32, #tpu.memory_space<vmem>>, vector<8x1xf32>,
    } else {
    }
    %c0 = arith.constant 0 : index
    %c0_1 = arith.constant 0 : index
    %3 = vector.load %arg2[%c0, %c0_1] : memref<8x256xf32, #tpu.memory_space<vmem>>, vector<8x256xf32>
    %c0_2 = arith.constant 0 : index
    %c0_3 = arith.constant 0 : index
    %4 = vector.load %arg3[%c0_2, %c0_3] : memref<8x1xf32, #tpu.memory_space<vmem>>, vector<8x1xf32>
    %cst = arith.constant dense<0.000000e+00> : vector<8xf32>
    %5 = vector.multi_reduction <add>, %3, %cst [1] : vector<8x256xf32> to vector<8xf32>
    %6 = vector.shape_cast %5 : vector<8xf32> to vector<8x1xf32>
    %7 = arith.addf %4, %6 : vector<8x1xf32>
    %c0_4 = arith.constant 0 : index
    %c0_5 = arith.constant 0 : index
    %8 = vector.load %arg3[%c0_4, %c0_5] : memref<8x1xf32, #tpu.memory_space<vmem>>, vector<8x1xf32>
    tpu.vector_store %arg3[%c0_4, %c0_5], %7 {strides = array<i32>} : memref<8x1xf32, #tpu.memory_space<vmem>>, vector<8x1xf32>,
    %c0_6 = arith.constant 0 : index
    %c0_7 = arith.constant 0 : index
    %9 = vector.load %arg4[%c0_6, %c0_7] : memref<8x1xf32, #tpu.memory_space<vmem>>, vector<8x1xf32>
    %10 = arith.mulf %3, %3 : vector<8x256xf32>
    %cst_8 = arith.constant dense<0.000000e+00> : vector<8xf32>
    %11 = vector.multi_reduction <add>, %10, %cst_8 [1] : vector<8x256xf32> to vector<8xf32>
    %12 = vector.shape_cast %11 : vector<8xf32> to vector<8x1xf32>
    %13 = arith.addf %9, %12 : vector<8x1xf32>
    %c0_9 = arith.constant 0 : index
    %c0_10 = arith.constant 0 : index
    %14 = vector.load %arg4[%c0_9, %c0_10] : memref<8x1xf32, #tpu.memory_space<vmem>>, vector<8x1xf32>
    tpu.vector_store %arg4[%c0_9, %c0_10], %13 {strides = array<i32>} : memref<8x1xf32, #tpu.memory_space<vmem>>, vector<8x1xf32>,
    return
  }
  func.func @transform_0(%arg0: i32, %arg1: i32) -> (i32, i32) {
    %c0_i32 = arith.constant 0 : i32
    return %arg0, %arg1 : i32, i32
  }
  func.func @transform_1(%arg0: i32, %arg1: i32) -> (i32, i32) {
    %c0_i32 = arith.constant 0 : i32
    %c0_i32_0 = arith.constant 0 : i32
    return %arg0, %c0_i32 : i32, i32
  }
  func.func @transform_2(%arg0: i32, %arg1: i32) -> (i32, i32) {
    %c0_i32 = arith.constant 0 : i32
    %c0_i32_0 = arith.constant 0 : i32
    return %arg0, %c0_i32 : i32, i32
  }
}

module attributes {stable_mosaic.version = 11 : i64} {
  func.func @_apply_kernel(%arg0: i32, %arg1: i32, %arg2: memref<8x256xf32, #tpu.memory_space<vmem>>, %arg3: memref<8x1xf32, #tpu.memory_space<vmem>>, %arg4: memref<8x1xf32, #tpu.memory_space<vmem>>, %arg5: memref<8x256xf32, #tpu.memory_space<vmem>>) attributes {dimension_semantics = [#tpu.dimension_semantics<parallel>, #tpu.dimension_semantics<parallel>], iteration_bounds = array<i64: 1, 1>, scalar_prefetch = 0 : i64, scratch_operands = 0 : i64, tpu.core_type = #tpu.core_type<tc>, window_params = [{transform_indices = @transform_0, window_bounds = array<i64: 8, 256>}, {transform_indices = @transform_1, window_bounds = array<i64: 8, 1>}, {transform_indices = @transform_2, window_bounds = array<i64: 8, 1>}, {transform_indices = @transform_3, window_bounds = array<i64: 8, 256>}]} {
    %c0 = arith.constant 0 : index
    %c0_0 = arith.constant 0 : index
    %0 = vector.load %arg2[%c0, %c0_0] : memref<8x256xf32, #tpu.memory_space<vmem>>, vector<8x256xf32>
    %c0_1 = arith.constant 0 : index
    %c0_2 = arith.constant 0 : index
    %1 = vector.load %arg3[%c0_1, %c0_2] : memref<8x1xf32, #tpu.memory_space<vmem>>, vector<8x1xf32>
    %2 = vector.broadcast %1 : vector<8x1xf32> to vector<8x256xf32>
    %3 = arith.mulf %0, %2 : vector<8x256xf32>
    %c0_3 = arith.constant 0 : index
    %c0_4 = arith.constant 0 : index
    %4 = vector.load %arg4[%c0_3, %c0_4] : memref<8x1xf32, #tpu.memory_space<vmem>>, vector<8x1xf32>
    %5 = vector.broadcast %4 : vector<8x1xf32> to vector<8x256xf32>
    %6 = arith.addf %3, %5 : vector<8x256xf32>
    %c0_5 = arith.constant 0 : index
    %c0_6 = arith.constant 0 : index
    %7 = vector.load %arg5[%c0_5, %c0_6] : memref<8x256xf32, #tpu.memory_space<vmem>>, vector<8x256xf32>
    tpu.vector_store %arg5[%c0_5, %c0_6], %6 {strides = array<i32>} : memref<8x256xf32, #tpu.memory_space<vmem>>, vector<8x256xf32>,
    return
  }
  func.func @transform_0(%arg0: i32, %arg1: i32) -> (i32, i32) {
    %c0_i32 = arith.constant 0 : i32
    return %arg0, %arg1 : i32, i32
  }
  func.func @transform_1(%arg0: i32, %arg1: i32) -> (i32, i32) {
    %c0_i32 = arith.constant 0 : i32
    %c0_i32_0 = arith.constant 0 : i32
    return %arg0, %c0_i32 : i32, i32
  }
  func.func @transform_2(%arg0: i32, %arg1: i32) -> (i32, i32) {
    %c0_i32 = arith.constant 0 : i32
    %c0_i32_0 = arith.constant 0 : i32
    return %arg0, %c0_i32 : i32, i32
  }
  func.func @transform_3(%arg0: i32, %arg1: i32) -> (i32, i32) {
    %c0_i32 = arith.constant 0 : i32
    return %arg0, %arg1 : i32, i32
  }
}

</mosaic_0001>

<bundles_post_ra>
// kernel: hybrid_normalization.2
= control target key start
LH: loop header
LB: loop body
LE: loop exit
PB: predicated region body
PF: predicated region fallthrough
CT: control target
= control target key end

     0   :  { %vm14_vm0 = vcmask 7168   ;;  %v43_v2 = vmov 0.0   ;;  %s87_s0 = inlined_call_operand.vmem [shape: f32[8,256], index: 0, kind: input, shape index: {}]   ;;  %s88_s1 = inlined_call_operand.vmem [shape: f32[8,1], index: 1, kind: output, shape index: {0}]   ;;  %s89_s2 = inlined_call_operand.vmem [shape: f32[8,1], index: 2, kind: output, shape index: {1}]  }
   0x1   :  { %v17_v0 = vld [vmem:[%s87_s0] sm:$0xff]  ;;  %v18_v1 = vld [vmem:[%s87_s0 + $0x8] sm:$0xff]  ;;  %15 = vst.msk [vmem:[%s88_s1] sm:$0xff] %vm14_vm0, %v43_v2  ;;  %16 = vst.msk [vmem:[%s89_s2] sm:$0xff] %vm14_vm0, %v43_v2 }
   0x2   :  { %v20_v3 = vadd.f32 %v18_v1, %v17_v0  ;;  %v27_v4 = vmul.f32 %v17_v0, %v17_v0  ;;  %v28_v5 = vmul.f32 %v18_v1, %v18_v1 }
   0x4   :  { %21 = vadd.xlane.f32.xlu0 %v20_v3  ;;  %v29_v6 = vadd.f32 %v28_v5, %v27_v4 }
   0x8   :  { %30 = vadd.xlane.f32.xlu0 %v29_v6  ;;  %v19_v7 = vld [vmem:[%s88_s1] sm:$0xff] }
   0x9   :  { %v26_v10 = vld [vmem:[%s89_s2] sm:$0xff] }
  0x91   :  { %v22_v8 = vpop.xlane.xlu0 %21 }
  0x92   :  { %v23_v9 = vadd.f32 %v22_v8, %v19_v7 }
  0x94   :  { %25 = vst.msk [vmem:[%s88_s1] sm:$0xff] %vm14_vm0, %v23_v9 }
  0x95   :  { %v31_v11 = vpop.xlane.xlu0 %30 }
  0x96   :  { %v32_v12 = vadd.f32 %v31_v11, %v26_v10 }
  0x98   :  { %33 = vst.msk [vmem:[%s89_s2] sm:$0xff] %vm14_vm0, %v32_v12 }

// kernel: hybrid_normalization.3
= control target key start
LH: loop header
LB: loop body
LE: loop exit
PB: predicated region body
PF: predicated region fallthrough
CT: control target
= control target key end

     0   :  { %v40_v0 = vmov 0   ;;  %s79_s1 = inlined_call_operand.vmem [shape: f32[8,1], index: 1, kind: input, shape index: {}]   ;;  %s80_s2 = inlined_call_operand.vmem [shape: f32[8,1], index: 2, kind: input, shape index: {}]   ;;  %s81_s0 = inlined_call_operand.vmem [shape: f32[8,256], index: 0, kind: input, shape index: {}]   ;;  %s82_s3 = inlined_call_operand.vmem [shape: f32[8,256], index: 3, kind: output, shape index: {}]  }
   0x1   :  { %39 = vset.pattern.permute.xlu0 %v40_v0  ;;  %v16_v1 = vld [vmem:[%s79_s1] sm:$0xff]  ;;  %v15_v5 = vld [vmem:[%s81_s0 + $0x8] sm:$0xff] }
   0x2   :  { %19 = vperm.xlu0 %39, %v16_v1   ;;  %v24_v2 = vld [vmem:[%s80_s2] sm:$0xff] }
   0x3   :  { %v14_v4 = vld [vmem:[%s81_s0] sm:$0xff] }
   0x6   :  { %27 = vperm.xlu0 %39, %v24_v2  }
  0x81   :  { %v20_v3 = vpop.permute.xlu0 %19 }
  0x82   :  { %v22_v6 = vmul.f32 %v20_v3, %v14_v4  ;;  %v23_v7 = vmul.f32 %v20_v3, %v15_v5 }
  0x85   :  { %v28_v8 = vpop.permute.xlu0 %27 }
  0x86   :  { %v30_v9 = vadd.f32 %v28_v8, %v22_v6  ;;  %v31_v10 = vadd.f32 %v28_v8, %v23_v7 }
  0x88   :  { %32 = vst [vmem:[%s82_s3] sm:$0xff] %v30_v9  ;;  %33 = vst [vmem:[%s82_s3 + $0x8] sm:$0xff] %v31_v10 }

</bundles_post_ra>
